<compile_context>
chip_gen: v5e
topology: v5e:2x2
jax: 0.10.0
libtpu: 0.0.40
codegen_flags: <defaults>
</compile_context>

<pallas_src>
import functools

import jax
import jax.numpy as jnp
from jax.experimental import pallas as pl
from jax.experimental.pallas import tpu as pltpu


def _conv1_bn_relu_kernel(x_ref, w_ref, b_ref, o_ref):
    # x_ref : (1, Cin, T)   compute dtype
    # w_ref : (Cout, Cin)   compute dtype (BN-folded weights)
    # b_ref : (Cout, 1)     f32          (BN-folded bias)
    # o_ref : (1, Cout, T)  output dtype
    acc = jnp.dot(w_ref[...], x_ref[0],
                  preferred_element_type=jnp.float32)     # (Cout, T), f32 accum
    acc = acc + b_ref[...]                                 # bias broadcast over lanes
    o_ref[0] = jnp.maximum(acc, 0.0).astype(o_ref.dtype)


def _vmem_capacity_bytes():
    """Physical VMEM per TensorCore (v5e/v6e: 128 MiB, v7x: 64 MiB)."""
    try:
        return int(pltpu.get_tpu_info().vmem_capacity_bytes)
    except Exception:
        return 64 << 20  # conservative fallback (works on every generation)


def conv1_relu_forward(x, w, gamma, beta, running_mean, running_var,
                       eps=1e-5, compute_dtype=None, max_tile_lanes=16384):
    """Forward of Conv1Relu (1x1 conv, no bias) + BatchNorm2d (eval) + ReLU.

    x : (B, Cin, H, W)        NCHW, like PyTorch
    w : (Cout, Cin, 1, 1)     conv weight
    gamma, beta, running_mean, running_var : (Cout,)  BN params / stats
    compute_dtype : dtype for the kernel inputs/outputs (default: x.dtype).
                    bf16 halves HBM read traffic; accumulation stays f32.
    returns (B, Cout, H, W) in compute_dtype
    """
    B, Cin, H, W = x.shape
    Cout = w.shape[0]
    HW = H * W

    cdtype = jnp.dtype(compute_dtype) if compute_dtype is not None else x.dtype
    out_dtype = cdtype

    # ---- Fold BN into the conv (computed once, in f32, in the wrapper). ----
    inv_std = jax.lax.rsqrt(running_var.astype(jnp.float32) + eps)
    scale = gamma.astype(jnp.float32) * inv_std                       # (Cout,)
    w_eff = (w.reshape(Cout, Cin).astype(jnp.float32)
             * scale[:, None]).astype(cdtype)                         # (Cout, Cin)
    b_eff = (beta.astype(jnp.float32)
             - running_mean.astype(jnp.float32) * scale
             ).reshape(Cout, 1)                                       # (Cout, 1) f32

    # ---- Spatial flatten: free reshape, no pad, no extra HBM pass. ----
    x_flat = x.reshape(B, Cin, HW)
    if x_flat.dtype != cdtype:
        # NOTE: if the surrounding model already runs bf16 activations, pass
        # them in directly; this cast is an extra HBM pass otherwise.
        x_flat = x_flat.astype(cdtype)

    # ---- VMEM-budget-derived spatial tile (per chip generation). ----
    bx = jnp.dtype(cdtype).itemsize
    bo = jnp.dtype(out_dtype).itemsize
    phys = _vmem_capacity_bytes()
    # ~70% of physical: ~45 MiB on v7x (64 MiB/TC), ~90 MiB on v5e/v6e (128 MiB).
    budget = min(int(phys * 0.7), 96 << 20)
    fixed = 2 * Cout * Cin * bx + 2 * Cout * 4          # weights + bias (2 bufs each)
    per_lane = 2 * Cin * bx + 2 * Cout * bo             # double-buffered x + out
    tile_budget = max(128, ((budget - fixed) // per_lane) // 128 * 128)
    tile_budget = min(tile_budget, max_tile_lanes)

    if HW <= tile_budget:
        tile = HW            # single full-extent block (always layout-legal)
    else:
        tile = tile_budget   # multiple of 128; last block ragged -> masked store
    n_spatial = pl.cdiv(HW, tile)

    footprint = 2 * Cin * tile * bx + 2 * Cout * tile * bo + fixed
    vmem_limit = min(phys, max(32 << 20, footprint + (8 << 20)))

    out = pl.pallas_call(
        _conv1_bn_relu_kernel,
        out_shape=jax.ShapeDtypeStruct((B, Cout, HW), out_dtype),
        grid=(B, n_spatial),
        in_specs=[
            pl.BlockSpec((1, Cin, tile), lambda b, s: (b, 0, s)),   # x tile
            pl.BlockSpec((Cout, Cin), lambda b, s: (0, 0)),         # folded W
            pl.BlockSpec((Cout, 1), lambda b, s: (0, 0)),           # folded bias
        ],
        out_specs=pl.BlockSpec((1, Cout, tile), lambda b, s: (b, 0, s)),
        compiler_params=pltpu.CompilerParams(
            dimension_semantics=("parallel", "parallel"),
            vmem_limit_bytes=int(vmem_limit),
        ),
    )(x_flat, w_eff, b_eff)

    return out.reshape(B, Cout, H, W)


def _reference(x, w, gamma, beta, running_mean, running_var, eps=1e-5):
    # Pure-JAX mirror of the PyTorch module in eval mode.
    y = jax.lax.conv_general_dilated(
        x.astype(jnp.float32), w.astype(jnp.float32),
        window_strides=(1, 1), padding="VALID",
        dimension_numbers=("NCHW", "OIHW", "NCHW"))
    mean = running_mean[None, :, None, None]
    var = running_var[None, :, None, None]
    g = gamma[None, :, None, None]
    b = beta[None, :, None, None]
    y = (y - mean) / jnp.sqrt(var + eps) * g + b
    return jnp.maximum(y, 0.0)


if __name__ == "__main__":
    key = jax.random.PRNGKey(0)
    k_x, k_w, k_g, k_b, k_m, k_v = jax.random.split(key, 6)

    B, Cin, Cout = 2, 4, 8
    H, Wd = 16, 16

    x = jax.random.normal(k_x, (B, Cin, H, Wd), dtype=jnp.float32)
    # Deterministic synthetic parameters (not a checkpoint load).
    w = jax.random.normal(k_w, (Cout, Cin, 1, 1), dtype=jnp.float32) * 0.2
    gamma = 1.0 + 0.1 * jax.random.normal(k_g, (Cout,), dtype=jnp.float32)
    beta = 0.1 * jax.random.normal(k_b, (Cout,), dtype=jnp.float32)
    running_mean = 0.1 * jax.random.normal(k_m, (Cout,), dtype=jnp.float32)
    running_var = 0.5 + jax.random.uniform(k_v, (Cout,), dtype=jnp.float32)

    ref = _reference(x, w, gamma, beta, running_mean, running_var)

    # 1) f32 path: HW=256 fits one full-extent spatial block, no pad/slice.
    fwd = jax.jit(functools.partial(conv1_relu_forward, eps=1e-5))
    out = jax.block_until_ready(fwd(x, w, gamma, beta, running_mean, running_var))
    assert out.shape == (B, Cout, H, Wd)
    assert jnp.allclose(out, ref, atol=1e-5, rtol=1e-5)

    # 2) Ragged spatial tiling path: HW=200 with a forced 128-lane tile ->
    #    two blocks, last one partial (masked boundary store, still no pad).
    x2 = jax.random.normal(k_x, (B, Cin, 10, 20), dtype=jnp.float32)
    ref2 = _reference(x2, w, gamma, beta, running_mean, running_var)
    fwd2 = jax.jit(functools.partial(conv1_relu_forward, eps=1e-5,
                                     max_tile_lanes=128))
    out2 = jax.block_until_ready(fwd2(x2, w, gamma, beta, running_mean, running_var))
    assert out2.shape == (B, Cout, 10, 20)
    assert jnp.allclose(out2, ref2, atol=1e-5, rtol=1e-5)

    # 3) bf16 compute path (halves HBM read traffic on this mem-bound op).
    fwd_bf16 = jax.jit(functools.partial(conv1_relu_forward, eps=1e-5,
                                         compute_dtype=jnp.bfloat16))
    out3 = jax.block_until_ready(
        fwd_bf16(x, w, gamma, beta, running_mean, running_var))
    assert out3.dtype == jnp.bfloat16
    assert jnp.allclose(out3.astype(jnp.float32), ref, atol=6e-2, rtol=6e-2)

    print("KERNEL_OK")
</pallas_src>

<mosaic_0001>
module attributes {stable_mosaic.version = 11 : i64} {
  func.func @_conv1_bn_relu_kernel(%arg0: i32, %arg1: i32, %arg2: memref<1x4x256xf32, #tpu.memory_space<vmem>>, %arg3: memref<8x4xf32, #tpu.memory_space<vmem>>, %arg4: memref<8x1xf32, #tpu.memory_space<vmem>>, %arg5: memref<1x8x256xf32, #tpu.memory_space<vmem>>) attributes {dimension_semantics = [#tpu.dimension_semantics<parallel>, #tpu.dimension_semantics<parallel>], iteration_bounds = array<i64: 2, 1>, scalar_prefetch = 0 : i64, scratch_operands = 0 : i64, tpu.core_type = #tpu.core_type<tc>, window_params = [{transform_indices = @transform_0, window_bounds = array<i64: 1, 4, 256>}, {pipeline_mode = #tpu.pipeline_mode<synchronous>, transform_indices = @transform_1, window_bounds = array<i64: 8, 4>}, {pipeline_mode = #tpu.pipeline_mode<synchronous>, transform_indices = @transform_2, window_bounds = array<i64: 8, 1>}, {transform_indices = @transform_3, window_bounds = array<i64: 1, 8, 256>}]} {
    %c0 = arith.constant 0 : index
    %c0_0 = arith.constant 0 : index
    %0 = vector.load %arg3[%c0, %c0_0] : memref<8x4xf32, #tpu.memory_space<vmem>>, vector<8x4xf32>
    %c0_1 = arith.constant 0 : index
    %c0_2 = arith.constant 0 : index
    %c0_3 = arith.constant 0 : index
    %1 = vector.load %arg2[%c0_1, %c0_2, %c0_3] : memref<1x4x256xf32, #tpu.memory_space<vmem>>, vector<1x4x256xf32>
    %2 = vector.shape_cast %1 : vector<1x4x256xf32> to vector<4x256xf32>
    %cst = arith.constant dense<0.000000e+00> : vector<8x256xf32>
    %3 = tpu.matmul %0, %2, %cst {dimension_numbers = #tpu.dot_dimension_numbers<[1], [0], [0], [1], [0, 0, 1, 1], [], []>} : vector<8x4xf32>, vector<4x256xf32>, vector<8x256xf32> -> vector<8x256xf32>
    %c0_4 = arith.constant 0 : index
    %c0_5 = arith.constant 0 : index
    %4 = vector.load %arg4[%c0_4, %c0_5] : memref<8x1xf32, #tpu.memory_space<vmem>>, vector<8x1xf32>
    %5 = vector.broadcast %4 : vector<8x1xf32> to vector<8x256xf32>
    %6 = arith.addf %3, %5 : vector<8x256xf32>
    %cst_6 = arith.constant 0.000000e+00 : f32
    %7 = vector.broadcast %cst_6 : f32 to vector<8x256xf32>
    %8 = arith.maximumf %6, %7 : vector<8x256xf32>
    %c0_7 = arith.constant 0 : index
    %c0_8 = arith.constant 0 : index
    %c0_9 = arith.constant 0 : index
    %9 = vector.load %arg5[%c0_7, %c0_8, %c0_9] : memref<1x8x256xf32, #tpu.memory_space<vmem>>, vector<1x8x256xf32>
    %10 = vector.shape_cast %9 : vector<1x8x256xf32> to vector<8x256xf32>
    %11 = vector.shape_cast %8 : vector<8x256xf32> to vector<1x8x256xf32>
    tpu.vector_store %arg5[%c0_7, %c0_8, %c0_9], %11 {strides = array<i32>} : memref<1x8x256xf32, #tpu.memory_space<vmem>>, vector<1x8x256xf32>,
    return
  }
  func.func @transform_0(%arg0: i32, %arg1: i32) -> (i32, i32, i32) {
    %c0_i32 = arith.constant 0 : i32
    %c0_i32_0 = arith.constant 0 : i32
    return %arg0, %c0_i32, %arg1 : i32, i32, i32
  }
  func.func @transform_1(%arg0: i32, %arg1: i32) -> (i32, i32) {
    %c0_i32 = arith.constant 0 : i32
    %c0_i32_0 = arith.constant 0 : i32
    %c0_i32_1 = arith.constant 0 : i32
    return %c0_i32, %c0_i32_0 : i32, i32
  }
  func.func @transform_2(%arg0: i32, %arg1: i32) -> (i32, i32) {
    %c0_i32 = arith.constant 0 : i32
    %c0_i32_0 = arith.constant 0 : i32
    %c0_i32_1 = arith.constant 0 : i32
    return %c0_i32, %c0_i32_0 : i32, i32
  }
  func.func @transform_3(%arg0: i32, %arg1: i32) -> (i32, i32, i32) {
    %c0_i32 = arith.constant 0 : i32
    %c0_i32_0 = arith.constant 0 : i32
    return %arg0, %c0_i32, %arg1 : i32, i32, i32
  }
}

</mosaic_0001>

<bundles_post_ra>
// kernel: conv1_relu_forward.1
= control target key start
LH: loop header
LB: loop body
LE: loop exit
PB: predicated region body
PF: predicated region fallthrough
CT: control target
= control target key end

     0   :  { %s450_s12 = smov 0   ;;  %s452_s13 = smov 0   ;;  %s489_s0 = inlined_call_operand.vmem [shape: f32[2,4,256], index: 0, kind: input, shape index: {}]   ;;  %s490_s1 = inlined_call_operand.vmem [shape: f32[8,4], index: 1, kind: input, shape index: {}]   ;;  %s491_s2 = inlined_call_operand.vmem [shape: f32[8,1], index: 2, kind: input, shape index: {}]   ;;  %s492_s3 = inlined_call_operand.vmem [shape: f32[2,8,256], index: 3, kind: output, shape index: {}]  }
   0x1   :  { %s454_s14 = smov 0  }
   0x2 LB: > { %s25_s15 = sadd.s32 1, %s423_s13  ;;  %p366_p0 = scmp.ge.s32.totalorder %s427_s14, 1  ;;  %s427_s14 = sphi %s454_s14, %s13_s14   ;;  %s423_s13 = sphi %s452_s13, %s494_s13   ;;  %s419_s12 = sphi %s450_s12, %s493_s12  }
   0x3   : > { %p27_p1 = scmp.ge.s32.totalorder %s25_s15, 2  ;;  %p158_p2 = scmp.lt.s32.totalorder %s427_s14, 3 }
   0x5   : > { %s496_s15 = smov (%p27_p1, %s25_s15), 0  ;;  %p159_p3 = pnand %p366_p0, %p158_p2 }
   0x6   : > { %p191_p4 = scmp.lt.s32.totalorder (!%p159_p3), %s419_s12, 1 }
   0x7   : > { %162 = sbr.rel (%p159_p3) target bundleno = 157 (0x9d), region = 32 }
   0xc   : > { %v212_v0 = vld [vmem:[%s491_s2] sm:$0xff]  ;;  %v429_v1 = vmov 0   ;;  %s498_s12 = smov (!%p191_p4, %s419_s12), 1  ;;  %vm226_vm0 = vcmask 1043456   ;;  %vm222_vm1 = vcmask 31744  }
   0xd   : > { %404 = vset.pattern.permute.xlu0 %v429_v1  ;;  %s377_s18 = sshll.u32 %s498_s12, 3  ;;  %v210_v3 = vld [vmem:[%s490_s1] sm:$0xff]  ;;  %s378_s24 = sshll.u32 %s498_s12, 4 }
   0xe   : > { %215 = vperm.xlu0 %404, %v212_v0   ;;  %s198_s21 = scalar_lea.vmem %s489_s0, %s377_s18  ;;  %s208_s27 = scalar_lea.vmem %s492_s3, %s378_s24 }
   0xf   : > { %v211_v2 = vld [vmem:[%s198_s21] sm:$0xff] }
  0x10   : > { %219 = vst [vmem:[#allocation1] ss:$2 sm:$0xff] %v211_v2 }
  0x17   : > { %v220_v4 = vld.sshfl [vmem:[#allocation1] sm:$0xff pattern:$0x75316420]  ;;  %v221_v5 = vld.sshfl [vmem:[#allocation1 + $0x8] sm:$0xff pattern:$0x75316420] }
  0x18   : > { %371 = vmatpush.msk.msra.mxu0 %vm226_vm0, %v220_v4  ;;  %373 = vmatpush.msk.msra.mxu1 %vm226_vm0, %v221_v5 }
  0x19   : > { %372 = vmatmul.msk.f32.vlgmr.msra.gmra.mxu0 %vm222_vm1, %v210_v3  ;;  %374 = vmatmul.msk.f32.vlgmr.msra.gmra.mxu1 %vm222_vm1, %v210_v3 }
  0x80   : > { %v216_v6 = vpop.permute.xlu0 %215 }
  0x96   : > { %v248_v7 = vpop.f32.mrf.mxu0  ;;  %v268_v8 = vpop.f32.mrf.mxu1 }
  0x97   : > { %v249_v9 = vadd.f32 %v248_v7, %v216_v6  ;;  %v269_v10 = vadd.f32 %v268_v8, %v216_v6 }
  0x99   : > { %v271_v11 = vmax.f32 %v249_v9, 0.0  ;;  %v272_v12 = vmax.f32 %v269_v10, 0.0 }
  0x9b   : > { %273 = vst [vmem:[%s208_s27] sm:$0xff] %v271_v11 }
  0x9c   : > { %274 = vst [vmem:[%s208_s27 + $0x8] sm:$0xff] %v272_v12 }
  0x9d PF: > { %s13_s14 = sadd.s32 1, %s427_s14   ;;  %s493_s12 = smov %s423_s13 }
  0x9e   : > { %p10_p5 = scmp.ge.s32.totalorder %s13_s14, 4   ;;  %s494_s13 = smov %s496_s15 }
  0xa0   :  { %12 = sbr.rel (!%p10_p5) target bundleno = 2 (0x2), region = 62 }

</bundles_post_ra>
